<compile_context>
chip_gen: v7x
topology: tpu7x:2x2x1
jax: 0.10.0
libtpu: 0.0.40
codegen_flags: <defaults>
</compile_context>

<pallas_src>
from functools import partial

import jax
import jax.numpy as jnp
from jax.experimental import pallas as pl
from jax.experimental.pallas import tpu as pltpu

NEG_SLOPE = 0.01           # torch.nn.LeakyReLU default
OH_WIDTH = 32              # 14 + 5 + 10 = 29 one-hot lanes, padded to 32


# ------------------------------- Pallas kernel --------------------------------
def _mlp_kernel(x_ref, w_ref, out_ref):
    """Fully fused MLP forward (all shapes derived from the refs).

    x_ref  : (R, 128) f32, R = 3 * B_pad stacked [conn; auth; state] rows
             lanes [0:3)           integer category ids (stored as f32)
             lanes [32:32+n_cont)  continuous features (pre-placed by wrapper)
             other lanes           zero
    w_ref  : ((L+3)*128 + 16, 128) bf16 packed weight slab
             rows [li*128:(li+1)*128)   hidden-layer li weight
                                        (embeddings folded into layer 0)
             rows [(L+br)*128:+128)     output-layer weight, branch br (0..2)
             rows [(L+3)*128:+16)       biases: row li = hidden bias li,
                                        row L = output bias
    out_ref: (B_pad, 128) f32, logits in lanes [0:num_class)
    """
    R = x_ref.shape[0]
    L = (w_ref.shape[0] - 16) // 128 - 3
    Bp = R // 3

    x = x_ref[...]
    lane = jax.lax.broadcasted_iota(jnp.int32, (R, 128), 1)

    # Embedding lookups as an in-register one-hot construction (lane-iota
    # compare).  NOTE: out-of-range ids silently drop / bleed between one-hot
    # blocks (PyTorch nn.Embedding would raise); ids are assumed in-range.
    i0 = x[:, 0:1].astype(jnp.int32)           # conn_state -> lanes [0, 14)
    i1 = x[:, 1:2].astype(jnp.int32) + 14      # proto      -> lanes [14, 19)
    i2 = x[:, 2:3].astype(jnp.int32) + 19      # service    -> lanes [19, 29)
    onehot = ((lane == i0) | (lane == i1) | (lane == i2)).astype(jnp.float32)

    # One fused layer-0 input: one-hot in lanes [0:32), continuous features
    # already sitting in lanes [32:), zeros elsewhere  ->  embedding + concat +
    # first Linear collapse into a single matmul.
    fused = jnp.where(lane < OH_WIDTH, onehot, x)

    bias = w_ref[(L + 3) * 128:(L + 3) * 128 + 16, :].astype(jnp.float32)

    # Shared hidden stack — run ONCE for all three weight-sharing branches.
    # TODO(synk): Dropout(0.05) between hidden layers is identity in eval mode;
    # training-mode dropout (RNG mask) is not implemented.
    h = fused.astype(jnp.bfloat16)
    acc = None
    for li in range(L):
        w = w_ref[li * 128:(li + 1) * 128, :]                         # bf16
        acc = jnp.dot(h, w, preferred_element_type=jnp.float32)
        acc = acc + bias[li:li + 1, :]
        acc = jnp.where(acc > 0, acc, NEG_SLOPE * acc)                # LeakyReLU (f32)
        h = acc.astype(jnp.bfloat16)

    # Output Linear over concat([h_conn, h_auth, h_state]) == sum of 3 branch
    # row-slice matmuls, accumulated in registers, ONE lane-dense final store.
    out = bias[L:L + 1, :]
    for br in range(3):
        hb = acc[br * Bp:(br + 1) * Bp, :].astype(jnp.bfloat16)
        wb = w_ref[(L + br) * 128:(L + br + 1) * 128, :]
        out = out + jnp.dot(hb, wb, preferred_element_type=jnp.float32)
    out_ref[...] = out.astype(out_ref.dtype)


# -------------------------- one-time weight packing ----------------------------
def pack_params(params, num_class):
    """Model-load-time packing (runs ONCE, outside the per-call jitted path).

    Folds the three embedding tables into the layer-0 weight, zero-pads every
    section to a dense (128, 128) block, and stacks hidden weights, the three
    per-branch output-weight blocks and all biases into a single bf16 slab so
    the kernel needs exactly 2 input DMAs.
    """
    hidden_w = params['hidden_w']
    hidden_b = params['hidden_b']
    hidden_dims = [int(w.shape[1]) for w in hidden_w]
    L = len(hidden_dims)
    assert 1 <= L and L + 1 <= 16, "bias section holds at most 16 rows"
    assert max(hidden_dims) <= 128 and num_class <= 128

    W0 = jnp.asarray(hidden_w[0], jnp.float32)            # (17 + n_cont, H0)
    n_cont = int(W0.shape[0]) - 17
    H0 = hidden_dims[0]
    assert OH_WIDTH + n_cont <= 128

    hi = jax.lax.Precision.HIGHEST
    w0 = jnp.zeros((128, 128), jnp.float32)
    w0 = w0.at[0:14, :H0].set(jnp.matmul(params['emb0'], W0[0:8, :], precision=hi))
    w0 = w0.at[14:19, :H0].set(jnp.matmul(params['emb1'], W0[8:11, :], precision=hi))
    w0 = w0.at[19:29, :H0].set(jnp.matmul(params['emb2'], W0[11:17, :], precision=hi))
    w0 = w0.at[OH_WIDTH:OH_WIDTH + n_cont, :H0].set(W0[17:, :])
    blocks = [w0]

    for li in range(1, L):
        w = jnp.zeros((128, 128), jnp.float32)
        w = w.at[:hidden_dims[li - 1], :hidden_dims[li]].set(hidden_w[li])
        blocks.append(w)

    H_last = hidden_dims[-1]
    Wout = jnp.asarray(params['out_w'], jnp.float32)       # (3*H_last, num_class)
    for br in range(3):
        w = jnp.zeros((128, 128), jnp.float32)
        w = w.at[:H_last, :num_class].set(Wout[br * H_last:(br + 1) * H_last, :])
        blocks.append(w)

    bias = jnp.zeros((16, 128), jnp.float32)
    for li in range(L):
        bias = bias.at[li, :hidden_dims[li]].set(hidden_b[li])
    bias = bias.at[L, :num_class].set(params['out_b'])
    blocks.append(bias)

    return jnp.concatenate(blocks, axis=0).astype(jnp.bfloat16)


# --------------------------------- forward ------------------------------------
@partial(jax.jit, static_argnames=('num_class',))
def mlp_forward(w_slab, conn, auth, state, *, num_class):
    B, F = conn.shape
    n_cont = F - 3
    Bp = ((B + 7) // 8) * 8

    xs = [jnp.pad(v, ((0, Bp - B), (0, 0))) for v in (conn, auth, state)]
    x = jnp.concatenate(xs, axis=0)                        # (3*Bp, 3 + n_cont)
    R = 3 * Bp
    # 128-lane kernel input: ids in lanes [0:3), continuous pre-placed at
    # lanes [32:32+n_cont) so layer 0 is a single matmul inside the kernel.
    x128 = jnp.concatenate([
        x[:, :3],
        jnp.zeros((R, OH_WIDTH - 3), jnp.float32),
        x[:, 3:],
        jnp.zeros((R, 128 - OH_WIDTH - n_cont), jnp.float32),
    ], axis=1)

    vmem = pl.BlockSpec(memory_space=pltpu.MemorySpace.VMEM)
    out = pl.pallas_call(
        _mlp_kernel,
        out_shape=jax.ShapeDtypeStruct((Bp, 128), jnp.float32),
        in_specs=[vmem, vmem],
        out_specs=vmem,
    )(x128, w_slab)
    return out[:B, :num_class]


# ----------------------------- pure-JAX reference -----------------------------
def embed_and_concat(params, inputs):
    dense = {}
    for etype in ('conn', 'auth', 'state'):
        x = inputs[etype]
        e0 = params['emb0'][x[:, 0].astype(jnp.int32)]     # (B, 8)
        e1 = params['emb1'][x[:, 1].astype(jnp.int32)]     # (B, 3)
        e2 = params['emb2'][x[:, 2].astype(jnp.int32)]     # (B, 6)
        dense[etype] = jnp.concatenate([e0, e1, e2, x[:, 3:]], axis=1)
    return dense


def reference_forward(params, inputs):
    dense = embed_and_concat(params, inputs)
    hs = []
    for etype in ('conn', 'auth', 'state'):
        h = dense[etype]
        for w, b in zip(params['hidden_w'], params['hidden_b']):
            h = h @ w + b
            h = jnp.where(h > 0, h, NEG_SLOPE * h)
        hs.append(h)
    h = jnp.concatenate(hs, axis=1)
    return h @ params['out_w'] + params['out_b']


def init_params(key, input_dim, hidden_dims, num_class):
    def uniform(k, shape, fan_in):
        bound = 1.0 / jnp.sqrt(jnp.float32(fan_in))
        return jax.random.uniform(k, shape, jnp.float32, -bound, bound)

    keys = jax.random.split(key, 4 + 2 * len(hidden_dims))
    params = {
        'emb0': jax.random.normal(keys[0], (14, 8), jnp.float32),
        'emb1': jax.random.normal(keys[1], (5, 3), jnp.float32),
        'emb2': jax.random.normal(keys[2], (10, 6), jnp.float32),
    }
    hidden_w, hidden_b = [], []
    prev = input_dim
    for i, h in enumerate(hidden_dims):
        kw, kb = jax.random.split(keys[3 + i])
        hidden_w.append(uniform(kw, (prev, h), prev))
        hidden_b.append(uniform(kb, (h,), prev))
        prev = h
    params['hidden_w'] = hidden_w
    params['hidden_b'] = hidden_b
    kw, kb = jax.random.split(keys[-1])
    params['out_w'] = uniform(kw, (3 * hidden_dims[-1], num_class), 3 * hidden_dims[-1])
    params['out_b'] = uniform(kb, (num_class,), 3 * hidden_dims[-1])
    return params


if __name__ == "__main__":
    # raw per-etype input: [B, 3 + n_cont]  (cols 0..2 are integer category ids)
    # embedded input_dim  = 8 + 3 + 6 + n_cont = 17 + 15 = 32
    B = 8
    n_cont = 15
    input_dim = 17 + n_cont          # 32
    hidden_dims = [32, 32]
    num_class = 4

    key = jax.random.PRNGKey(0)
    k_par, k_in = jax.random.split(key)
    params = init_params(k_par, input_dim, hidden_dims, num_class)

    inputs = {}
    for i, etype in enumerate(('conn', 'auth', 'state')):
        k = jax.random.fold_in(k_in, i)
        k0, k1, k2, kc = jax.random.split(k, 4)
        idx0 = jax.random.randint(k0, (B, 1), 0, 14).astype(jnp.float32)
        idx1 = jax.random.randint(k1, (B, 1), 0, 5).astype(jnp.float32)
        idx2 = jax.random.randint(k2, (B, 1), 0, 10).astype(jnp.float32)
        cont = jax.random.normal(kc, (B, n_cont), jnp.float32)
        inputs[etype] = jnp.concatenate([idx0, idx1, idx2, cont], axis=1)

    # One-time weight packing (model-load time, not in the per-call path).
    w_slab = jax.block_until_ready(pack_params(params, num_class))

    out = jax.block_until_ready(
        mlp_forward(w_slab, inputs['conn'], inputs['auth'], inputs['state'],
                    num_class=num_class))
    ref = jax.block_until_ready(reference_forward(params, inputs))

    assert out.shape == (B, num_class), out.shape
    # bf16 matmul operands (per the perf review) -> loosened tolerance vs the
    # f32 reference.
    assert jnp.allclose(out, ref, atol=5e-2, rtol=5e-2), "mismatch vs JAX reference"

    print("KERNEL_OK")
</pallas_src>

<mosaic_0001>
module attributes {stable_mosaic.version = 11 : i64} {
  func.func @_mlp_kernel(%arg0: memref<24x128xf32, #tpu.memory_space<vmem>>, %arg1: memref<656x128xbf16, #tpu.memory_space<vmem>>, %arg2: memref<8x128xf32, #tpu.memory_space<vmem>>) attributes {dimension_semantics = [], scalar_prefetch = 0 : i64, scratch_operands = 0 : i64, tpu.core_type = #tpu.core_type<tc>} {
    %c0 = arith.constant 0 : index
    %c0_0 = arith.constant 0 : index
    %0 = vector.load %arg0[%c0, %c0_0] : memref<24x128xf32, #tpu.memory_space<vmem>>, vector<24x128xf32>
    %1 = tpu.iota {dimensions = array<i32: 1>} : vector<24x128xi32>
    %2 = vector.extract_strided_slice %0 {offsets = [0, 0], sizes = [24, 1], strides = [1, 1]} : vector<24x128xf32> to vector<24x1xf32>
    %3 = arith.fptosi %2 : vector<24x1xf32> to vector<24x1xi32>
    %4 = vector.extract_strided_slice %0 {offsets = [0, 1], sizes = [24, 1], strides = [1, 1]} : vector<24x128xf32> to vector<24x1xf32>
    %5 = arith.fptosi %4 : vector<24x1xf32> to vector<24x1xi32>
    %c14_i32 = arith.constant 14 : i32
    %6 = vector.broadcast %c14_i32 : i32 to vector<24x1xi32>
    %7 = arith.addi %5, %6 : vector<24x1xi32>
    %8 = vector.extract_strided_slice %0 {offsets = [0, 2], sizes = [24, 1], strides = [1, 1]} : vector<24x128xf32> to vector<24x1xf32>
    %9 = arith.fptosi %8 : vector<24x1xf32> to vector<24x1xi32>
    %c19_i32 = arith.constant 19 : i32
    %10 = vector.broadcast %c19_i32 : i32 to vector<24x1xi32>
    %11 = arith.addi %9, %10 : vector<24x1xi32>
    %12 = vector.broadcast %3 : vector<24x1xi32> to vector<24x128xi32>
    %13 = arith.cmpi eq, %1, %12 : vector<24x128xi32>
    %14 = vector.broadcast %7 : vector<24x1xi32> to vector<24x128xi32>
    %15 = arith.cmpi eq, %1, %14 : vector<24x128xi32>
    %16 = arith.ori %13, %15 : vector<24x128xi1>
    %17 = vector.broadcast %11 : vector<24x1xi32> to vector<24x128xi32>
    %18 = arith.cmpi eq, %1, %17 : vector<24x128xi32>
    %19 = arith.ori %16, %18 : vector<24x128xi1>
    %20 = arith.extui %19 : vector<24x128xi1> to vector<24x128xi32>
    %21 = arith.sitofp %20 : vector<24x128xi32> to vector<24x128xf32>
    %c32_i32 = arith.constant 32 : i32
    %22 = vector.broadcast %c32_i32 : i32 to vector<24x128xi32>
    %23 = arith.cmpi slt, %1, %22 : vector<24x128xi32>
    %24 = arith.select %23, %21, %0 : vector<24x128xi1>, vector<24x128xf32>
    %c640 = arith.constant 640 : index
    %c0_1 = arith.constant 0 : index
    %25 = vector.load %arg1[%c640, %c0_1] : memref<656x128xbf16, #tpu.memory_space<vmem>>, vector<16x128xbf16>
    %26 = arith.extf %25 : vector<16x128xbf16> to vector<16x128xf32>
    %27 = arith.truncf %24 : vector<24x128xf32> to vector<24x128xbf16>
    %c0_2 = arith.constant 0 : index
    %c0_3 = arith.constant 0 : index
    %28 = vector.load %arg1[%c0_2, %c0_3] : memref<656x128xbf16, #tpu.memory_space<vmem>>, vector<128x128xbf16>
    %cst = arith.constant dense<0.000000e+00> : vector<24x128xf32>
    %29 = tpu.matmul %27, %28, %cst {dimension_numbers = #tpu.dot_dimension_numbers<[1], [0], [0], [1], [0, 0, 1, 1], [], []>} : vector<24x128xbf16>, vector<128x128xbf16>, vector<24x128xf32> -> vector<24x128xf32>
    %30 = vector.extract_strided_slice %26 {offsets = [0, 0], sizes = [1, 128], strides = [1, 1]} : vector<16x128xf32> to vector<1x128xf32>
    %31 = vector.broadcast %30 : vector<1x128xf32> to vector<24x128xf32>
    %32 = arith.addf %29, %31 : vector<24x128xf32>
    %cst_4 = arith.constant 0.000000e+00 : f32
    %33 = vector.broadcast %cst_4 : f32 to vector<24x128xf32>
    %34 = arith.cmpf ogt, %32, %33 : vector<24x128xf32>
    %cst_5 = arith.constant 0.00999999977 : f32
    %35 = vector.broadcast %cst_5 : f32 to vector<24x128xf32>
    %36 = arith.mulf %35, %32 : vector<24x128xf32>
    %37 = arith.select %34, %32, %36 : vector<24x128xi1>, vector<24x128xf32>
    %38 = arith.truncf %37 : vector<24x128xf32> to vector<24x128xbf16>
    %c128 = arith.constant 128 : index
    %c0_6 = arith.constant 0 : index
    %39 = vector.load %arg1[%c128, %c0_6] : memref<656x128xbf16, #tpu.memory_space<vmem>>, vector<128x128xbf16>
    %cst_7 = arith.constant dense<0.000000e+00> : vector<24x128xf32>
    %40 = tpu.matmul %38, %39, %cst_7 {dimension_numbers = #tpu.dot_dimension_numbers<[1], [0], [0], [1], [0, 0, 1, 1], [], []>} : vector<24x128xbf16>, vector<128x128xbf16>, vector<24x128xf32> -> vector<24x128xf32>
    %41 = vector.extract_strided_slice %26 {offsets = [1, 0], sizes = [1, 128], strides = [1, 1]} : vector<16x128xf32> to vector<1x128xf32>
    %42 = vector.broadcast %41 : vector<1x128xf32> to vector<24x128xf32>
    %43 = arith.addf %40, %42 : vector<24x128xf32>
    %cst_8 = arith.constant 0.000000e+00 : f32
    %44 = vector.broadcast %cst_8 : f32 to vector<24x128xf32>
    %45 = arith.cmpf ogt, %43, %44 : vector<24x128xf32>
    %cst_9 = arith.constant 0.00999999977 : f32
    %46 = vector.broadcast %cst_9 : f32 to vector<24x128xf32>
    %47 = arith.mulf %46, %43 : vector<24x128xf32>
    %48 = arith.select %45, %43, %47 : vector<24x128xi1>, vector<24x128xf32>
    %49 = vector.extract_strided_slice %26 {offsets = [2, 0], sizes = [1, 128], strides = [1, 1]} : vector<16x128xf32> to vector<1x128xf32>
    %50 = vector.extract_strided_slice %48 {offsets = [0, 0], sizes = [8, 128], strides = [1, 1]} : vector<24x128xf32> to vector<8x128xf32>
    %51 = arith.truncf %50 : vector<8x128xf32> to vector<8x128xbf16>
    %c256 = arith.constant 256 : index
    %c0_10 = arith.constant 0 : index
    %52 = vector.load %arg1[%c256, %c0_10] : memref<656x128xbf16, #tpu.memory_space<vmem>>, vector<128x128xbf16>
    %cst_11 = arith.constant dense<0.000000e+00> : vector<8x128xf32>
    %53 = tpu.matmul %51, %52, %cst_11 {dimension_numbers = #tpu.dot_dimension_numbers<[1], [0], [0], [1], [0, 0, 1, 1], [], []>} : vector<8x128xbf16>, vector<128x128xbf16>, vector<8x128xf32> -> vector<8x128xf32>
    %54 = vector.broadcast %49 : vector<1x128xf32> to vector<8x128xf32>
    %55 = arith.addf %54, %53 : vector<8x128xf32>
    %56 = vector.extract_strided_slice %48 {offsets = [8, 0], sizes = [8, 128], strides = [1, 1]} : vector<24x128xf32> to vector<8x128xf32>
    %57 = arith.truncf %56 : vector<8x128xf32> to vector<8x128xbf16>
    %c384 = arith.constant 384 : index
    %c0_12 = arith.constant 0 : index
    %58 = vector.load %arg1[%c384, %c0_12] : memref<656x128xbf16, #tpu.memory_space<vmem>>, vector<128x128xbf16>
    %cst_13 = arith.constant dense<0.000000e+00> : vector<8x128xf32>
    %59 = tpu.matmul %57, %58, %cst_13 {dimension_numbers = #tpu.dot_dimension_numbers<[1], [0], [0], [1], [0, 0, 1, 1], [], []>} : vector<8x128xbf16>, vector<128x128xbf16>, vector<8x128xf32> -> vector<8x128xf32>
    %60 = arith.addf %55, %59 : vector<8x128xf32>
    %61 = vector.extract_strided_slice %48 {offsets = [16, 0], sizes = [8, 128], strides = [1, 1]} : vector<24x128xf32> to vector<8x128xf32>
    %62 = arith.truncf %61 : vector<8x128xf32> to vector<8x128xbf16>
    %c512 = arith.constant 512 : index
    %c0_14 = arith.constant 0 : index
    %63 = vector.load %arg1[%c512, %c0_14] : memref<656x128xbf16, #tpu.memory_space<vmem>>, vector<128x128xbf16>
    %cst_15 = arith.constant dense<0.000000e+00> : vector<8x128xf32>
    %64 = tpu.matmul %62, %63, %cst_15 {dimension_numbers = #tpu.dot_dimension_numbers<[1], [0], [0], [1], [0, 0, 1, 1], [], []>} : vector<8x128xbf16>, vector<128x128xbf16>, vector<8x128xf32> -> vector<8x128xf32>
    %65 = arith.addf %60, %64 : vector<8x128xf32>
    %c0_16 = arith.constant 0 : index
    %c0_17 = arith.constant 0 : index
    %66 = vector.load %arg2[%c0_16, %c0_17] : memref<8x128xf32, #tpu.memory_space<vmem>>, vector<8x128xf32>
    tpu.vector_store %arg2[%c0_16, %c0_17], %65 {strides = array<i32>} : memref<8x128xf32, #tpu.memory_space<vmem>>, vector<8x128xf32>,
    return
  }
}

</mosaic_0001>

<bundles_post_ra>
// kernel: mlp_forward.1
= control target key start
LH: loop header
LB: loop body
LE: loop exit
PB: predicated region body
PF: predicated region fallthrough
CT: control target
= control target key end

     0   :  { %7 = vsyncpa [#allocation3], 0  ;;  %s957_s9 = smov [#allocation2]   ;;  %s1066_s0 = inlined_call_operand.vmem [shape: f32[24,128], index: 0, kind: input, shape index: {}]   ;;  %s1067_s1 = inlined_call_operand.hbm [shape: bf16[656,128], index: 1, kind: input, shape index: {}]   ;;  %s1068_s2 = inlined_call_operand.vmem [shape: f32[8,128], index: 2, kind: output, shape index: {}]  }
   0x1   :  { %s15_s10 = sshll.u32 %s957_s9, 4  ;;  %s933_s13 = scalar_lea.hbm %s1067_s1, 5248  ;;  %s16_s10 = int_to_ptr.vmem [resolvable:$true] %s15_s10 }
   0x2   :  { %p934_p0 = scmp.ne.s32.totalorder %s1067_s1, %s933_s13  ;;  %p937_p1 = scmp.lt.u32.totalorder %s933_s13, %s1067_s1 }
   0x4   :  { %p939_p2 = pnand %p937_p1, %p934_p0 }
   0x6   :  { %942 = shalt.err (!%p939_p2)
}
   0x7   :  { %s943_s18 = scalar_lea.vmem %s16_s10, 5248  ;;  %p948_p4 = scmp.lt.s32.totalorder %s16_s10, %s16_s10 }
   0x8   :  { %p944_p3 = scmp.ne.s32.totalorder %s16_s10, %s943_s18  ;;  %p949_p5 = scmp.lt.s32.totalorder %s943_s18, %s943_s18 }
   0xa   :  { %p950_p6 = por %p949_p5, %p948_p4 }
   0xc   :  { %p951_p7 = pnand %p950_p6, %p944_p3 }
   0xe   :  { %954 = shalt.err (!%p951_p7)
}
   0xf   :  { %s958_s19 = smov 64   ;;  %s959_s20 = smov 4  }
  0x10   :  { %21 = dma.hbm_to_vmem [thread:$0]  %s1067_s1, 5248, %s16_s10, [#allocation3], %s958_s19, %s958_s19, %s959_s20  }
  0x11   :  { %955 = dma.done.wait [#allocation3], 5248  }
  0x12   :  { %956 = vsyncadd [#allocation3], 4294962048  ;;  %v960_v0 = vmov 0   ;;  %v961_v1 = vmov 1   ;;  %v995_v2 = vld [vmem:[%s1066_s0] sm:$0xff]  ;;  %v1000_v3 = vld [vmem:[%s1066_s0 + $0x8] sm:$0xff]  ;;  %v29_v30 = vlaneseq }
  0x13   :  { %889 = vset.pattern.permute.xlu0 %v960_v0  ;;  %890 = vset.pattern.permute.xlu1 %v961_v1  ;;  %v1005_v4 = vld [vmem:[%s1066_s0 + $0x10] sm:$0xff]  ;;  %v875_v5 = vtrunc.f32 %v995_v2  ;;  %v877_v6 = vtrunc.f32 %v1000_v3  ;;  %v893_v8 = vld [vmem:[#allocation2] sm:$0xff]   ;;  %v894_v9 = vld [vmem:[#allocation2 + $0x8] sm:$0xff]   ;;  %v962_v22 = vmov 2   ;;  %v963_v23 = vmov 0.0  }
  0x14   :  { %v879_v7 = vtrunc.f32 %v1005_v4  ;;  %766 = vmatprep.subr.bf16.mxu1 %v893_v8  ;;  %v895_v14 = vld [vmem:[#allocation2 + $0x10] sm:$0xff]   ;;  %v896_v18 = vld [vmem:[#allocation2 + $0x18] sm:$0xff]   ;;  %v897_v20 = vld [vmem:[#allocation2 + $0x20] sm:$0xff]   ;;  %806 = vmatprep.subr.bf16.mxu0 %v963_v23  ;;  %v30_v33 = vand.u32 127, %v29_v30  ;;  %v1025_v60 = vshrl.u32 %v29_v30, 7 }
  0x15   :  { %v876_v10 = vcvt.f32.s32 %v875_v5  ;;  %v878_v11 = vcvt.f32.s32 %v877_v6  ;;  %767 = vmatpush3.bf16.msra.mxu1 %v893_v8  ;;  %v898_v21 = vld [vmem:[#allocation2 + $0x28] sm:$0xff]   ;;  %v899_v25 = vld [vmem:[#allocation2 + $0x30] sm:$0xff]   ;;  %v900_v26 = vld [vmem:[#allocation2 + $0x38] sm:$0xff]  }
  0x16   :  { %v880_v12 = vcvt.f32.s32 %v879_v7  ;;  %768 = vmatprep.subr.bf16.mxu1 %v894_v9  ;;  %v901_v27 = vld [vmem:[#allocation2 + $0x40] sm:$0xff]   ;;  %vm88_vm9 = vcmp.lt.s32.totalorder %v30_v33, 32  ;;  %v902_v47 = vld [vmem:[#allocation2 + $0x48] sm:$0xff]   ;;  %v903_v48 = vld [vmem:[#allocation2 + $0x50] sm:$0xff]   ;;  %v114_v63 = vsub.s32 0, %v1025_v60 }
  0x17   :  { %41 = vperm.xlu0 %889, %v876_v10   ;;  %v34_v13 = vadd.s32 14, %v876_v10  ;;  %v35_v15 = vadd.s32 14, %v878_v11  ;;  %v37_v17 = vadd.s32 19, %v876_v10  ;;  %v38_v19 = vadd.s32 19, %v878_v11  ;;  %v904_v49 = vld [vmem:[#allocation2 + $0x58] sm:$0xff]   ;;  %v905_v50 = vld [vmem:[#allocation2 + $0x60] sm:$0xff]  }
  0x18   :  { %v36_v16 = vadd.s32 14, %v880_v12  ;;  %v39_v24 = vadd.s32 19, %v880_v12  ;;  %v906_v51 = vld [vmem:[#allocation2 + $0x68] sm:$0xff]   ;;  %v907_v52 = vld [vmem:[#allocation2 + $0x70] sm:$0xff]   ;;  %v908_v53 = vld [vmem:[#allocation2 + $0x78] sm:$0xff]  }
  0x19   :  { %53 = vperm.xlu1 %890, %v34_v13   ;;  %769 = vmatpush3.bf16.msra.mxu1 %v894_v9  ;;  %v909_v54 = vld [vmem:[#allocation2 + $0x80] sm:$0xff]   ;;  %v910_v55 = vld [vmem:[#allocation2 + $0x88] sm:$0xff]   ;;  %v911_v56 = vld [vmem:[#allocation2 + $0x90] sm:$0xff]  }
  0x1a   :  { %770 = vmatprep.subr.bf16.mxu1 %v895_v14  ;;  %807 = vmatpush3.bf16.msra.mxu0 %v909_v54  ;;  %v912_v57 = vld [vmem:[#allocation2 + $0x98] sm:$0xff]   ;;  %v913_v58 = vld [vmem:[#allocation2 + $0xa0] sm:$0xff]   ;;  %v914_v59 = vld [vmem:[#allocation2 + $0xa8] sm:$0xff]  }
  0x1b   :  { %44 = vperm.xlu0 %889, %v878_v11   ;;  %808 = vmatprep.subr.bf16.mxu0 %v963_v23  ;;  %v92_v61 = vld [vmem:[#allocation2 + $0x140] sm:$0xf] }
  0x1c   :  { %v1027_v62 = vunpack.c.l.bf16 %v92_v61 }
  0x1d   :  { %56 = vperm.xlu1 %890, %v35_v15   ;;  %771 = vmatpush3.bf16.msra.mxu1 %v895_v14 }
  0x1e   :  { %772 = vmatprep.subr.bf16.mxu1 %v896_v18  ;;  %809 = vmatpush3.bf16.msra.mxu0 %v910_v55  ;;  %v115_v0 = vrot.slane %v1027_v62, %v114_v63 }
  0x1f   :  { %47 = vperm.xlu0 %889, %v880_v12   ;;  %810 = vmatprep.subr.bf16.mxu0 %v963_v23 }
  0x21   :  { %59 = vperm.xlu1 %890, %v36_v16   ;;  %773 = vmatpush3.bf16.msra.mxu1 %v896_v18  ;;  %v915_v16 = vld [vmem:[#allocation2 + $0xb0] sm:$0xff]   ;;  %v241_v18 = vsub.s32 1, %v1025_v60 }
  0x22   :  { %774 = vmatprep.subr.bf16.mxu1 %v897_v20  ;;  %811 = vmatpush3.bf16.msra.mxu0 %v911_v56 }
  0x23   :  { %891 = vset.pattern.permute.xlu0 %v962_v22  ;;  %812 = vmatprep.subr.bf16.mxu0 %v963_v23 }
  0x24   :  { %68 = vperm.xlu0 %891, %v37_v17   ;;  %v916_v17 = vld [vmem:[#allocation2 + $0xb8] sm:$0xff]  }
  0x25   :  { %892 = vset.pattern.permute.xlu1 %v962_v22  ;;  %775 = vmatpush3.bf16.msra.mxu1 %v897_v20 }
  0x26   :  { %71 = vperm.xlu1 %892, %v38_v19   ;;  %776 = vmatprep.subr.bf16.mxu1 %v898_v21  ;;  %v242_v19 = vrot.slane %v1027_v62, %v241_v18 }
  0x27   :  { %813 = vmatpush3.bf16.msra.mxu0 %v912_v57 }
  0x28   :  { %814 = vmatprep.subr.bf16.mxu0 %v963_v23 }
  0x29   :  { %777 = vmatpush3.bf16.msra.mxu1 %v898_v21 }
  0x2a   :  { %74 = vperm.xlu1 %892, %v39_v24   ;;  %778 = vmatprep.subr.bf16.mxu1 %v899_v25 }
  0x2b   :  { %815 = vmatpush3.bf16.msra.mxu0 %v913_v58 }
  0x2c   :  { %816 = vmatprep.subr.bf16.mxu0 %v963_v23 }
  0x2d   :  { %779 = vmatpush3.bf16.msra.mxu1 %v899_v25 }
  0x2e   :  { %780 = vmatprep.subr.bf16.mxu1 %v900_v26 }
  0x2f   :  { %817 = vmatpush3.bf16.msra.mxu0 %v914_v59 }
  0x30   :  { %818 = vmatprep.subr.bf16.mxu0 %v963_v23 }
  0x31   :  { %781 = vmatpush3.bf16.msra.mxu1 %v900_v26 }
  0x32   :  { %786 = vmatprep.subr.bf16.mxu1 %v901_v27 }
  0x33   :  { %819 = vmatpush3.bf16.msra.mxu0 %v915_v16 }
  0x34   :  { %820 = vmatprep.subr.bf16.mxu0 %v963_v23 }
  0x37   :  { %821 = vmatpush3.bf16.msra.mxu0 %v916_v17 }
  0x38   :  { %826 = vmatprep.subr.bf16.mxu0 %v963_v23 }
  0x96   :  { %v42_v28 = vpop.permute.xlu0 %41 }
  0x97   :  { %vm49_vm0 = vcmp.eq.s32.totalorder %v30_v33, %v42_v28 }
  0x98   :  { %v54_v29 = vpop.permute.xlu1 %53 }
  0x99   :  { %vm61_vm1 = vcmp.eq.s32.totalorder %v30_v33, %v54_v29  ;;  %v917_v29 = vld [vmem:[#allocation2 + $0xc0] sm:$0xff]  }
  0x9a   :  { %v45_v31 = vpop.permute.xlu0 %44  ;;  %vm64_vm4 = vmor %vm49_vm0, %vm61_vm1 }
  0x9b   :  { %vm50_vm2 = vcmp.eq.s32.totalorder %v30_v33, %v45_v31  ;;  %v918_v31 = vld [vmem:[#allocation2 + $0xc8] sm:$0xff]  }
  0x9c   :  { %v57_v32 = vpop.permute.xlu1 %56 }
  0x9d   :  { %vm62_vm3 = vcmp.eq.s32.totalorder %v30_v33, %v57_v32  ;;  %v919_v32 = vld [vmem:[#allocation2 + $0xd0] sm:$0xff]  }
  0x9e   :  { %v48_v34 = vpop.permute.xlu0 %47  ;;  %vm65_vm7 = vmor %vm50_vm2, %vm62_vm3  ;;  %vm964_vm3 = vmmov 0  }
  0x9f   :  { %vm51_vm12 = vcmp.eq.s32.totalorder %v30_v33, %v48_v34  ;;  %822 = vmatprep.mubr.msk.bf16.mxu0 %vm964_vm3, %v963_v23  ;;  %v921_v34 = vld [vmem:[#allocation2 + $0xe0] sm:$0xff]  }
  0xa0   :  { %v60_v35 = vpop.permute.xlu1 %59 }
  0xa1   :  { %vm63_vm10 = vcmp.eq.s32.totalorder %v30_v33, %v60_v35  ;;  %v922_v35 = vld [vmem:[#allocation2 + $0xe8] sm:$0xff]  }
  0xa2   :  { %vm66_vm13 = vmor %vm51_vm12, %vm63_vm10 }
  0xa3   :  { %v69_v36 = vpop.permute.xlu0 %68 }
  0xa4   :  { %vm76_vm5 = vcmp.eq.s32.totalorder %v30_v33, %v69_v36 }
  0xa5   :  { %vm79_vm6 = vmor %vm64_vm4, %vm76_vm5  ;;  %v72_v37 = vpop.permute.xlu1 %71 }
  0xa6   :  { %v676_v38 = vsel %vm79_vm6, 1.0, %v963_v23  ;;  %vm77_vm8 = vcmp.eq.s32.totalorder %v30_v33, %v72_v37  ;;  %v923_v37 = vld [vmem:[#allocation2 + $0xf0] sm:$0xff]  }
  0xa7   :  { %vm80_vm11 = vmor %vm65_vm7, %vm77_vm8  ;;  %v89_v41 = vsel %vm88_vm9, %v676_v38, %v995_v2 }
  0xa8   :  { %v677_v39 = vsel %vm80_vm11, 1.0, %v963_v23 }
  0xa9   :  { %v75_v40 = vpop.permute.xlu1 %74  ;;  %v90_v42 = vsel %vm88_vm9, %v677_v39, %v1000_v3  ;;  %v924_v39 = vld [vmem:[#allocation2 + $0xf8] sm:$0xff]  }
  0xaa   :  { %vm78_vm14 = vcmp.eq.s32.totalorder %v30_v33, %v75_v40  ;;  %v94_v43 = vpack.c.bf16 %v90_v42, %v89_v41  ;;  %v920_v33 = vld [vmem:[#allocation2 + $0xd8] sm:$0xff]   ;;  %v925_v41 = vld [vmem:[#allocation2 + $0x100] sm:$0xff]  }
  0xab   :  { %vm81_vm15 = vmor %vm66_vm13, %vm78_vm14 }
  0xac   :  { %v678_v44 = vsel %vm81_vm15, 1.0, %v963_v23  ;;  %782 = vmatprep.mubr.bf16.mxu1 %v94_v43  ;;  %v926_v43 = vld [vmem:[#allocation2 + $0x108] sm:$0xff]  }
  0xad   :  { %v91_v45 = vsel %vm88_vm9, %v678_v44, %v1005_v4  ;;  %v927_v44 = vld [vmem:[#allocation2 + $0x110] sm:$0xff]  }
  0xae   :  { %v95_v46 = vpack.c.bf16 %v91_v45, %v91_v45  ;;  %v928_v45 = vld [vmem:[#allocation2 + $0x118] sm:$0xff]  }
  0xb0   :  { %783 = vmatmul.mubr.bf16.vlgmr.msra.gmra.mrb[0].mxu1 %v95_v46  ;;  %v929_v46 = vld [vmem:[#allocation2 + $0x120] sm:$0xff]  }
  0xb1   :  { %787 = vmatpush3.bf16.msra.mxu1 %v901_v27 }
  0xb2   :  { %788 = vmatprep.subr.bf16.mxu1 %v902_v47 }
  0xb5   :  { %789 = vmatpush3.bf16.msra.mxu1 %v902_v47  ;;  %v930_v47 = vld [vmem:[#allocation2 + $0x128] sm:$0xff]  }
  0xb6   :  { %790 = vmatprep.subr.bf16.mxu1 %v903_v48 }
  0xb9   :  { %791 = vmatpush3.bf16.msra.mxu1 %v903_v48  ;;  %v931_v48 = vld [vmem:[#allocation2 + $0x130] sm:$0xff]  }
  0xba   :  { %792 = vmatprep.subr.bf16.mxu1 %v904_v49 }
  0xbd   :  { %793 = vmatpush3.bf16.msra.mxu1 %v904_v49 }
  0xbe   :  { %794 = vmatprep.subr.bf16.mxu1 %v905_v50 }
  0xc1   :  { %795 = vmatpush3.bf16.msra.mxu1 %v905_v50  ;;  %v932_v50 = vld [vmem:[#allocation2 + $0x138] sm:$0xff]  }
  0xc2   :  { %796 = vmatprep.subr.bf16.mxu1 %v906_v51 }
  0xc5   :  { %797 = vmatpush3.bf16.msra.mxu1 %v906_v51 }
  0xc6   :  { %798 = vmatprep.subr.bf16.mxu1 %v907_v52 }
  0xc9   :  { %799 = vmatpush3.bf16.msra.mxu1 %v907_v52 }
  0xca   :  { %800 = vmatprep.subr.bf16.mxu1 %v908_v53 }
  0xcd   :  { %801 = vmatpush3.bf16.msra.mxu1 %v908_v53  ;;  %v455_v53 = vsub.s32 2, %v1025_v60 }
  0xcf   :  { %v456_v54 = vrot.slane %v1027_v62, %v455_v53 }
 0x183   :  { %v784_v1 = vpop.f32.mrb[0].mxu1 }
 0x184   :  { %v207_v2 = vadd.f32 %v784_v1, %v115_v0  ;;  %v198_v3 = vpop.f32.mrb[1].mxu1 }
 0x185   :  { %v199_v4 = vadd.f32 %v198_v3, %v115_v0  ;;  %v785_v5 = vpop.f32.mrb[2].mxu1 }
 0x186   :  { %v217_v6 = vmul.f32 0.01, %v207_v2  ;;  %v201_v7 = vpop.f32.mrb[3].mxu1  ;;  %vm214_vm0 = vcmp.gt.f32.partialorder %v207_v2, 0.0 }
 0x187   :  { %v215_v8 = vmul.f32 0.01, %v199_v4  ;;  %v202_v9 = vadd.f32 %v201_v7, %v115_v0  ;;  %vm212_vm1 = vcmp.gt.f32.partialorder %v199_v4, 0.0 }
 0x188   :  { %v220_v11 = vsel %vm214_vm0, %v207_v2, %v217_v6 }
 0x189   :  { %vm213_vm2 = vcmp.gt.f32.partialorder %v202_v9, 0.0  ;;  %v216_v10 = vmul.f32 0.01, %v202_v9  ;;  %v218_v12 = vsel %vm212_vm1, %v199_v4, %v215_v8  ;;  %v222_v15 = vpack.c.bf16 %v220_v11, %v220_v11 }
 0x18b   :  { %v219_v13 = vsel %vm213_vm2, %v202_v9, %v216_v10 }
 0x18c   :  { %v221_v14 = vpack.c.bf16 %v219_v13, %v218_v12 }
 0x18e   :  { %802 = vmatprep.mubr.bf16.mxu1 %v221_v14 }
 0x18f   :  { %803 = vmatmul.mubr.bf16.vlgmr.msra.gmra.mrb[4].mxu1 %v222_v15 }
 0x262   :  { %v804_v20 = vpop.f32.mrb[4].mxu1 }
 0x263   :  { %v1037_v21 = vadd.f32 %v804_v20, %v242_v19  ;;  %v325_v22 = vpop.f32.mrb[5].mxu1 }
 0x264   :  { %v326_v24 = vadd.f32 %v325_v22, %v242_v19  ;;  %v805_v25 = vpop.f32.mrb[6].mxu1 }
 0x265   :  { %v328_v26 = vpop.f32.mrb[7].mxu1  ;;  %v344_v49 = vmul.f32 0.01, %v1037_v21  ;;  %vm341_vm6 = vcmp.gt.f32.partialorder %v1037_v21, 0.0 }
 0x266   :  { %vm339_vm4 = vcmp.gt.f32.partialorder %v326_v24, 0.0  ;;  %v342_v27 = vmul.f32 0.01, %v326_v24  ;;  %v329_v36 = vadd.f32 %v328_v26, %v242_v19 }
 0x267   :  { %v347_v51 = vsel %vm341_vm6, %v1037_v21, %v344_v49 }
 0x268   :  { %v345_v28 = vsel %vm339_vm4, %v326_v24, %v342_v27  ;;  %v343_v38 = vmul.f32 0.01, %v329_v36  ;;  %vm340_vm5 = vcmp.gt.f32.partialorder %v329_v36, 0.0  ;;  %v564_v52 = vpack.c.bf16 %v347_v51, %v347_v51 }
 0x269   :  { %v348_v30 = vpack.c.bf16 %v345_v28, %v345_v28 }
 0x26a   :  { %v346_v40 = vsel %vm340_vm5, %v329_v36, %v343_v38 }
 0x26b   :  { %823 = vmatmul.mubr.bf16.vlgmr.msra.gmra.mrb[0].mxu0 %v348_v30  ;;  %v458_v42 = vpack.c.bf16 %v346_v40, %v346_v40 }
 0x26c   :  { %827 = vmatpush3.bf16.msra.mxu0 %v917_v29  ;;  %842 = vmatprep.mubr.msk.bf16.mxu0 %vm964_vm3, %v963_v23 }
 0x26d   :  { %828 = vmatprep.subr.bf16.mxu0 %v963_v23 }
 0x270   :  { %829 = vmatpush3.bf16.msra.mxu0 %v918_v31 }
 0x271   :  { %830 = vmatprep.subr.bf16.mxu0 %v963_v23 }
 0x274   :  { %831 = vmatpush3.bf16.msra.mxu0 %v919_v32 }
 0x275   :  { %832 = vmatprep.subr.bf16.mxu0 %v963_v23 }
 0x278   :  { %833 = vmatpush3.bf16.msra.mxu0 %v920_v33 }
 0x279   :  { %834 = vmatprep.subr.bf16.mxu0 %v963_v23 }
 0x27c   :  { %835 = vmatpush3.bf16.msra.mxu0 %v921_v34 }
 0x27d   :  { %836 = vmatprep.subr.bf16.mxu0 %v963_v23 }
 0x280   :  { %837 = vmatpush3.bf16.msra.mxu0 %v922_v35 }
 0x281   :  { %838 = vmatprep.subr.bf16.mxu0 %v963_v23 }
 0x284   :  { %839 = vmatpush3.bf16.msra.mxu0 %v923_v37 }
 0x285   :  { %840 = vmatprep.subr.bf16.mxu0 %v963_v23 }
 0x288   :  { %841 = vmatpush3.bf16.msra.mxu0 %v924_v39 }
 0x289   :  { %846 = vmatprep.subr.bf16.mxu0 %v963_v23 }
 0x28b   :  { %843 = vmatmul.mubr.bf16.vlgmr.msra.gmra.mrb[0].mxu0 %v458_v42 }
 0x28c   :  { %847 = vmatpush3.bf16.msra.mxu0 %v925_v41  ;;  %862 = vmatprep.mubr.msk.bf16.mxu0 %vm964_vm3, %v963_v23 }
 0x28d   :  { %848 = vmatprep.subr.bf16.mxu0 %v963_v23 }
 0x290   :  { %849 = vmatpush3.bf16.msra.mxu0 %v926_v43 }
 0x291   :  { %850 = vmatprep.subr.bf16.mxu0 %v963_v23 }
 0x294   :  { %851 = vmatpush3.bf16.msra.mxu0 %v927_v44 }
 0x295   :  { %852 = vmatprep.subr.bf16.mxu0 %v963_v23 }
 0x298   :  { %853 = vmatpush3.bf16.msra.mxu0 %v928_v45 }
 0x299   :  { %854 = vmatprep.subr.bf16.mxu0 %v963_v23 }
 0x29c   :  { %855 = vmatpush3.bf16.msra.mxu0 %v929_v46 }
 0x29d   :  { %856 = vmatprep.subr.bf16.mxu0 %v963_v23 }
 0x2a0   :  { %857 = vmatpush3.bf16.msra.mxu0 %v930_v47 }
 0x2a1   :  { %858 = vmatprep.subr.bf16.mxu0 %v963_v23 }
 0x2a4   :  { %859 = vmatpush3.bf16.msra.mxu0 %v931_v48 }
 0x2a5   :  { %860 = vmatprep.subr.bf16.mxu0 %v963_v23 }
 0x2a8   :  { %861 = vmatpush3.bf16.msra.mxu0 %v932_v50 }
 0x2ab   :  { %863 = vmatmul.mubr.bf16.vlgmr.msra.gmra.mrb[0].mxu0 %v564_v52 }
 0x37e   :  { %v663_v55 = vpop.f32.mrb[0].mxu0 }
 0x37f   :  { %v866_v56 = vadd.f32 %v663_v55, %v456_v54  ;;  %v864_v57 = vpop.f32.mrb[1].mxu0 }
 0x380   :  { %v666_v58 = vpop.f32.mrb[2].mxu0 }
 0x381   :  { %670 = vst [vmem:[%s1068_s2] sm:$0xff] %v866_v56  ;;  %v865_v59 = vpop.f32.mrb[3].mxu0 }
 0x382   :  { %675 = vsyncpa [#allocation3], 1 }

</bundles_post_ra>
